<compile_context>
chip_gen: v6e
topology: v6e:2x2x1
jax: 0.10.0
libtpu: 0.0.40
codegen_flags: <defaults>
</compile_context>

<pallas_src>
import functools
import math

import jax
import jax.numpy as jnp
from jax import lax
from jax.experimental import pallas as pl
from jax.experimental.pallas import tpu as pltpu


def _round_up(x, m):
    return ((x + m - 1) // m) * m


def _vmem_capacity_bytes():
    """Best-effort VMEM capacity query; falls back to the smallest (v7x) size."""
    try:
        cap = int(pltpu.get_tpu_info().vmem_capacity_bytes)
        if cap > 0:
            return cap
    except Exception:
        pass
    return 64 * 1024 * 1024


def _choose_tile(num_tokens, cap):
    """Tokens per grid step: multiple of 8, divides num_tokens when possible,
    and leaves >= 2 grid steps so the parallel axis can use both TensorCores."""
    num_tokens = max(1, int(num_tokens))
    cap = max(8, _round_up(min(int(cap), max(num_tokens, 8)), 8))
    if num_tokens >= 16:
        cap = min(cap, _round_up(pl.cdiv(num_tokens, 2), 8))
    cap = max(8, (cap // 8) * 8)
    if num_tokens % 8 == 0:
        for t in range(cap, 7, -8):
            if num_tokens % t == 0:
                return t, num_tokens          # exact tiling, no padding
    t = cap
    return t, _round_up(num_tokens, t)        # ragged: pad ids, slice output


# ---------------------------------------------------------------------------
# Path "onehot": small resident vocab -> one MXU matmul per tile.
# ---------------------------------------------------------------------------
def _embed_onehot_kernel(ids_ref, table_ref, out_ref, *, scale, out_dtype):
    t = ids_ref.shape[0]
    vocab = table_ref.shape[0]
    ids = ids_ref[...]                                          # (t, 1) int32
    iota = lax.broadcasted_iota(jnp.int32, (t, vocab), 1)
    table = table_ref[...]
    onehot = (ids == iota).astype(table.dtype)                  # (t, vocab)
    if table.dtype == jnp.float32:
        # Multi-pass f32 MXU matmul; exact to ~2^-17 relative for a one-hot.
        rows = jnp.dot(onehot, table, preferred_element_type=jnp.float32,
                       precision=lax.Precision.HIGHEST)
    else:
        # bf16 one-hot x bf16 table with f32 accumulation is exact.
        rows = jnp.dot(onehot, table, preferred_element_type=jnp.float32)
    out_ref[...] = (rows * scale).astype(out_dtype)              # dense slab


# ---------------------------------------------------------------------------
# Paths "resident" / "hbm": DMA row gather, issue-all / wait-all.
# table_ref is either a VMEM-resident block (resident) or a raw HBM ref (hbm).
# ---------------------------------------------------------------------------
def _embed_dma_gather_kernel(ids_ref, table_ref, out_ref, rows_vmem, sem,
                             *, scale, t_tokens, out_dtype):
    base = pl.program_id(0) * t_tokens

    # Issue ALL row copies up front.  Every row of rows_vmem is written exactly
    # once, so there is no buffer-reuse hazard; all ids are read from SMEM
    # before any DMA wait.
    @pl.loop(0, t_tokens)
    def _issue(i):
        row = ids_ref[base + i]
        pltpu.make_async_copy(
            table_ref.at[pl.ds(row, 1), :],
            rows_vmem.at[pl.ds(i, 1), :],
            sem.at[0],
        ).start()

    # Drain: every copy moves the same number of bytes and signals the same
    # semaphore, so t_tokens equal-sized waits cover all of them.
    @pl.loop(0, t_tokens)
    def _drain(i):
        pltpu.make_async_copy(
            table_ref.at[pl.ds(0, 1), :],      # same-size descriptor
            rows_vmem.at[pl.ds(i, 1), :],
            sem.at[0],
        ).wait()

    # One dense (t, d_model) scale + cast + store (no per-row masked vst).
    out_ref[...] = (rows_vmem[...].astype(jnp.float32) * scale).astype(out_dtype)


# ---------------------------------------------------------------------------
# Wrapper
# ---------------------------------------------------------------------------
def bart_embedding_forward(input_ids, embed_weight, *, scale_embedding=True,
                           tokens_per_step=1024, out_dtype=None,
                           max_onehot_vocab=2048, resident_budget_bytes=None,
                           force_path=None):
    """input_ids: int array (..., seq_len); embed_weight: (vocab, d_model)."""
    vocab_size, d_model = embed_weight.shape
    table_dtype = jnp.dtype(embed_weight.dtype)
    out_dtype = jnp.dtype(out_dtype) if out_dtype is not None else table_dtype

    seq_len = input_ids.shape[-1]
    ids_2d = input_ids.reshape(-1, seq_len)          # .view(-1, seq_len)
    batch = ids_2d.shape[0]
    num_tokens = batch * seq_len

    # PyTorch's nn.Embedding raises on out-of-range ids; here we clamp so a bad
    # id can never drive a DMA out of bounds (documented behavioural delta).
    ids_flat = jnp.clip(ids_2d.reshape(num_tokens).astype(jnp.int32),
                        0, vocab_size - 1)

    vmem_cap = _vmem_capacity_bytes()
    if resident_budget_bytes is None:
        # 128 MiB-VMEM parts (v5e/v6e) keep much larger tables resident than
        # v7x (64 MiB per TensorCore).
        resident_budget_bytes = (48 << 20) if vmem_cap >= (100 << 20) else (22 << 20)

    table_bytes = vocab_size * d_model * table_dtype.itemsize
    table_fits = table_bytes <= resident_budget_bytes

    if force_path is None:
        if table_fits and vocab_size <= max_onehot_vocab and table_dtype == jnp.bfloat16:
            path = "onehot"
        elif table_fits:
            path = "resident"
        else:
            path = "hbm"
    else:
        path = force_path

    cap = int(tokens_per_step)
    if path == "onehot":
        onehot_budget = 4 << 20                      # cap the (t, vocab) one-hot
        cap = min(cap, max(8, (onehot_budget // max(1, vocab_size * 4)) // 8 * 8))
    t, padded_tokens = _choose_tile(num_tokens, cap)
    num_tiles = padded_tokens // t

    if padded_tokens != num_tokens:
        ids_flat = jnp.pad(ids_flat, (0, padded_tokens - num_tokens))

    embed_scale = float(math.sqrt(d_model)) if scale_embedding else 1.0
    out_tile_bytes = t * d_model * out_dtype.itemsize
    rows_tile_bytes = t * d_model * table_dtype.itemsize

    if path == "onehot":
        ids_col = ids_flat.reshape(padded_tokens, 1)
        kernel = functools.partial(_embed_onehot_kernel, scale=embed_scale,
                                   out_dtype=out_dtype)
        grid_spec = pltpu.PrefetchScalarGridSpec(
            num_scalar_prefetch=0,
            grid=(num_tiles,),
            in_specs=[
                pl.BlockSpec((t, 1), lambda i: (i, 0)),
                # Constant index_map -> table fetched from HBM exactly once.
                pl.BlockSpec((vocab_size, d_model), lambda i: (0, 0)),
            ],
            out_specs=pl.BlockSpec((t, d_model), lambda i: (i, 0)),
        )
        onehot_bytes = t * vocab_size * max(4, table_dtype.itemsize)
        # 2x table allowance: the constant block may still be double-buffered.
        vmem_limit = (2 * table_bytes + 2 * out_tile_bytes + 3 * onehot_bytes
                      + t * d_model * 4 + (8 << 20))
        operands = (ids_col, embed_weight)
    else:
        if path == "resident":
            table_spec = pl.BlockSpec((vocab_size, d_model), lambda i, ids: (0, 0))
        else:
            table_spec = pl.BlockSpec(memory_space=pl.ANY)       # raw HBM ref
        kernel = functools.partial(_embed_dma_gather_kernel, scale=embed_scale,
                                   t_tokens=t, out_dtype=out_dtype)
        # TODO(synk): for extremely long inputs, tile the ids into SMEM per
        # grid step instead of prefetching the whole flat vector.
        grid_spec = pltpu.PrefetchScalarGridSpec(
            num_scalar_prefetch=1,
            grid=(num_tiles,),
            in_specs=[table_spec],
            out_specs=pl.BlockSpec((t, d_model), lambda i, ids: (i, 0)),
            scratch_shapes=[
                pltpu.VMEM((t, d_model), table_dtype),   # gathered raw rows
                pltpu.SemaphoreType.DMA((1,)),
            ],
        )
        vmem_limit = rows_tile_bytes + 2 * out_tile_bytes + (4 << 20)
        if path == "resident":
            vmem_limit += 2 * table_bytes            # 2x allowance (see above)
        operands = (ids_flat, embed_weight)

    vmem_limit = int(min(max(vmem_limit, 32 << 20), int(0.9 * vmem_cap)))

    cost = pl.CostEstimate(
        flops=int(2 * padded_tokens * d_model
                  * (vocab_size if path == "onehot" else 1)),
        transcendentals=0,
        bytes_accessed=int(padded_tokens * 4
                           + padded_tokens * d_model * out_dtype.itemsize
                           + (table_bytes if path != "hbm"
                              else padded_tokens * d_model * table_dtype.itemsize)),
    )

    out_flat = pl.pallas_call(
        kernel,
        grid_spec=grid_spec,
        out_shape=jax.ShapeDtypeStruct((padded_tokens, d_model), out_dtype),
        compiler_params=pltpu.CompilerParams(
            dimension_semantics=("parallel",),       # token tiles independent
            vmem_limit_bytes=vmem_limit,
        ),
        cost_estimate=cost,
    )(*operands)

    if padded_tokens != num_tokens:
        out_flat = out_flat[:num_tokens]
    return out_flat.reshape(batch, seq_len, d_model)


if __name__ == "__main__":
    # Small synthetic config consistent with the module's __init__.
    vocab_size = 128
    d_model = 128
    pad_token_id = 1
    batch, seq_len = 2, 8

    key = jax.random.PRNGKey(0)
    k_w, k_ids = jax.random.split(key)

    # nn.Embedding init: N(0, 1) with the padding_idx row zeroed.
    embed_weight = jax.random.normal(k_w, (vocab_size, d_model), jnp.float32)
    embed_weight = embed_weight.at[pad_token_id].set(0.0)

    input_ids = jax.random.randint(
        k_ids, (batch, seq_len), minval=0, maxval=vocab_size, dtype=jnp.int32)
    input_ids = input_ids.at[0, -1].set(pad_token_id)
    input_ids = input_ids.at[1, -1].set(pad_token_id)

    scale = math.sqrt(d_model)
    ref = embed_weight[input_ids] * scale

    # 1) Default path for f32 weights: resident table + local DMA gather (exact).
    out_res = jax.block_until_ready(bart_embedding_forward(input_ids, embed_weight))
    assert out_res.shape == (batch, seq_len, d_model), out_res.shape
    assert jnp.allclose(out_res, ref, atol=1e-5, rtol=1e-5), "resident path mismatch"

    # 2) Large-vocab path: table stays in HBM, issue-all/wait-all DMA gather.
    out_hbm = jax.block_until_ready(
        bart_embedding_forward(input_ids, embed_weight, force_path="hbm",
                               tokens_per_step=8))
    assert out_hbm.shape == (batch, seq_len, d_model), out_hbm.shape
    assert jnp.allclose(out_hbm, ref, atol=1e-5, rtol=1e-5), "HBM-gather path mismatch"

    # 3) Small-vocab bf16 fast path: one-hot MXU gather (exact for bf16 tables).
    w_bf16 = embed_weight.astype(jnp.bfloat16)
    ref_bf16 = w_bf16[input_ids].astype(jnp.float32) * scale
    out_oh = jax.block_until_ready(
        bart_embedding_forward(input_ids, w_bf16, out_dtype=jnp.float32))
    assert out_oh.shape == (batch, seq_len, d_model), out_oh.shape
    assert jnp.allclose(out_oh, ref_bf16, atol=1e-5, rtol=1e-5), "one-hot path mismatch"

    print("KERNEL_OK")
</pallas_src>

<mosaic_0001>
module attributes {stable_mosaic.version = 11 : i64} {
  func.func @_embed_dma_gather_kernel(%arg0: i32, %arg1: memref<16xi32, #tpu.memory_space<smem>>, %arg2: memref<128x128xf32, #tpu.memory_space<vmem>>, %arg3: memref<8x128xf32, #tpu.memory_space<vmem>>, %arg4: memref<8x128xf32, #tpu.memory_space<vmem>>, %arg5: memref<1x!tpu.dma_semaphore, #tpu.memory_space<semaphore_mem>>) attributes {dimension_semantics = [#tpu.dimension_semantics<parallel>], iteration_bounds = array<i64: 2>, scalar_prefetch = 1 : i64, scratch_operands = 2 : i64, tpu.core_type = #tpu.core_type<tc>, window_params = [{pipeline_mode = #tpu.pipeline_mode<synchronous>, transform_indices = @transform_0, window_bounds = array<i64: 128, 128>}, {transform_indices = @transform_1, window_bounds = array<i64: 8, 128>}]} {
    %c8_i32 = arith.constant 8 : i32
    %0 = arith.muli %arg0, %c8_i32 : i32
    %c0_i32 = arith.constant 0 : i32
    %c8_i32_0 = arith.constant 8 : i32
    %1 = arith.addi %c0_i32, %c8_i32_0 : i32
    %c1_i32 = arith.constant 1 : i32
    scf.for %arg6 = %c0_i32 to %1 step %c1_i32  : i32 {
      %c1_i32_9 = arith.constant 1 : i32
      %7 = arith.muli %arg6, %c1_i32_9 : i32
      %c0_i32_10 = arith.constant 0 : i32
      %8 = arith.addi %c0_i32_10, %7 : i32
      %9 = arith.addi %0, %8 : i32
      %10 = arith.index_cast %9 : i32 to index
      %11 = memref.load %arg1[%10] : memref<16xi32, #tpu.memory_space<smem>>
      %c0_i32_11 = arith.constant 0 : i32
      %c0_i32_12 = arith.constant 0 : i32
      %12 = tpu.memref_slice %arg2[%11, %c0_i32_12] : memref<128x128xf32, #tpu.memory_space<vmem>> -> memref<1x128xf32, #tpu.memory_space<vmem>>
      %c0_i32_13 = arith.constant 0 : i32
      %13 = tpu.memref_slice %arg4[%8, %c0_i32_13] : memref<8x128xf32, #tpu.memory_space<vmem>> -> memref<1x128xf32, #tpu.memory_space<vmem>>
      %14 = tpu.memref_slice %arg5[%c0_i32_11] : memref<1x!tpu.dma_semaphore, #tpu.memory_space<semaphore_mem>> -> memref<1x!tpu.dma_semaphore, #tpu.memory_space<semaphore_mem>>
      %15 = tpu.memref_squeeze %14 : memref<1x!tpu.dma_semaphore, #tpu.memory_space<semaphore_mem>> -> memref<!tpu.dma_semaphore, #tpu.memory_space<semaphore_mem>>
      tpu.enqueue_dma source(%12 : memref<1x128xf32, #tpu.memory_space<vmem>>) target(%13 : memref<1x128xf32, #tpu.memory_space<vmem>>) target_semaphore(%15 : memref<!tpu.dma_semaphore, #tpu.memory_space<semaphore_mem>>)
    }
    %c8_i32_1 = arith.constant 8 : i32
    %c0_i32_2 = arith.constant 0 : i32
    %c8_i32_3 = arith.constant 8 : i32
    %2 = arith.addi %c0_i32_2, %c8_i32_3 : i32
    %c1_i32_4 = arith.constant 1 : i32
    scf.for %arg6 = %c0_i32_2 to %2 step %c1_i32_4  : i32 {
      %c1_i32_9 = arith.constant 1 : i32
      %7 = arith.muli %arg6, %c1_i32_9 : i32
      %c0_i32_10 = arith.constant 0 : i32
      %8 = arith.addi %c0_i32_10, %7 : i32
      %c0_i32_11 = arith.constant 0 : i32
      %c0_i32_12 = arith.constant 0 : i32
      %c0_i32_13 = arith.constant 0 : i32
      %9 = tpu.memref_slice %arg2[%c0_i32_12, %c0_i32_13] : memref<128x128xf32, #tpu.memory_space<vmem>> -> memref<1x128xf32, #tpu.memory_space<vmem>>
      %c0_i32_14 = arith.constant 0 : i32
      %10 = tpu.memref_slice %arg4[%8, %c0_i32_14] : memref<8x128xf32, #tpu.memory_space<vmem>> -> memref<1x128xf32, #tpu.memory_space<vmem>>
      %11 = tpu.memref_slice %arg5[%c0_i32_11] : memref<1x!tpu.dma_semaphore, #tpu.memory_space<semaphore_mem>> -> memref<1x!tpu.dma_semaphore, #tpu.memory_space<semaphore_mem>>
      %12 = tpu.memref_squeeze %11 : memref<1x!tpu.dma_semaphore, #tpu.memory_space<semaphore_mem>> -> memref<!tpu.dma_semaphore, #tpu.memory_space<semaphore_mem>>
      tpu.wait_dma2 semaphore(%12 : memref<!tpu.dma_semaphore, #tpu.memory_space<semaphore_mem>>) src(%9 : memref<1x128xf32, #tpu.memory_space<vmem>>) dst(%10 : memref<1x128xf32, #tpu.memory_space<vmem>>)
    }
    %c8_i32_5 = arith.constant 8 : i32
    %c0 = arith.constant 0 : index
    %c0_6 = arith.constant 0 : index
    %3 = vector.load %arg4[%c0, %c0_6] : memref<8x128xf32, #tpu.memory_space<vmem>>, vector<8x128xf32>
    %cst = arith.constant 11.3137083 : f32
    %4 = vector.broadcast %cst : f32 to vector<8x128xf32>
    %5 = arith.mulf %3, %4 : vector<8x128xf32>
    %c0_7 = arith.constant 0 : index
    %c0_8 = arith.constant 0 : index
    %6 = vector.load %arg3[%c0_7, %c0_8] : memref<8x128xf32, #tpu.memory_space<vmem>>, vector<8x128xf32>
    tpu.vector_store %arg3[%c0_7, %c0_8], %5 {strides = array<i32>} : memref<8x128xf32, #tpu.memory_space<vmem>>, vector<8x128xf32>,
    return
  }
  func.func @transform_0(%arg0: i32, %arg1: memref<16xi32, #tpu.memory_space<smem>>) -> (i32, i32) {
    %c0_i32 = arith.constant 0 : i32
    %c0_i32_0 = arith.constant 0 : i32
    %c0_i32_1 = arith.constant 0 : i32
    return %c0_i32, %c0_i32_0 : i32, i32
  }
  func.func @transform_1(%arg0: i32, %arg1: memref<16xi32, #tpu.memory_space<smem>>) -> (i32, i32) {
    %c0_i32 = arith.constant 0 : i32
    %c0_i32_0 = arith.constant 0 : i32
    return %arg0, %c0_i32 : i32, i32
  }
}

</mosaic_0001>

<bundles_post_ra>
// kernel: tpu_custom_call.1
= control target key start
LH: loop header
LB: loop body
LE: loop exit
PB: predicated region body
PF: predicated region fallthrough
CT: control target
= control target key end

     0   :  { %s486_s9 = smov [#allocation5]   ;;  %s627_s0 = inlined_call_operand.hbm [shape: s32[16], index: 0, kind: input, shape index: {}]   ;;  %s628_s1 = inlined_call_operand.hbm [shape: f32[128,128], index: 1, kind: input, shape index: {}]   ;;  %s629_s2 = inlined_call_operand.hbm [shape: f32[16,128], index: 2, kind: output, shape index: {}]  }
   0x1   :  { %8 = dma.hbm_to_smem %s627_s0, 16, %s486_s9, [#allocation4] }
   0x2   :  { %450 = dma.done.wait [#allocation4], 16 }
   0x3   :  { %451 = vsyncadd [#allocation4], 4294967280 }
   0x4   :  { %10 = sfence }
   0x5   :  { %11 = vsyncpa [#allocation7], 0 }
   0x6   :  { %12 = vsyncpa [#allocation8], 0 }
   0x7   :  { %14 = vsyncpa [#allocation8 + $0x1], 0  ;;  %s509_s12 = smov 0   ;;  %s511_s13 = smov 0  }
   0x8   :  { %s513_s14 = smov 0   ;;  %s515_s15 = smov 0  }
   0x9 LB: > { %s530_s0 = sadd.s32 4294967295, %s476_s15   ;;  %s285_s16 = sadd.s32 4294967294, %s476_s15   ;;  %s476_s15 = sphi %s515_s15, %s637_s15   ;;  %s472_s14 = sphi %s513_s14, %s636_s14   ;;  %s468_s13 = sphi %s511_s13, %s635_s13   ;;  %s464_s12 = sphi %s509_s12, %s634_s12  }
   0xa   : > { %s534_s17 = sadd.s32 1, %s476_s15   ;;  %s48_s18 = sadd.s32 1, %s472_s14 }
   0xb   : > { %s45_s19 = ssub.s32 %s476_s15, %s534_s17  ;;  %p58_p0 = scmp.ne.s32.totalorder %s472_s14, %s468_s13 }
   0xc   : > { %p46_p1 = scmp.eq.s32.totalorder %s45_s19, 0  ;;  %p59_p2 = scmp.eq.s32.totalorder %s530_s0, 1 }
   0xd   : > { %p64_p3 = scmp.ne.s32.totalorder %s468_s13, %s464_s12  ;;  %p65_p4 = scmp.eq.s32.totalorder %s285_s16, 1 }
   0xe   : > { %s545_s20 = scalar_select %p46_p1, %s472_s14, %s48_s18  }
   0xf   : > { %p547_p5 = por %p59_p2, %p58_p0  ;;  %p551_p6 = por %p65_p4, %p64_p3 }
  0x10   : > { %p286_p7 = scmp.ge.s32.totalorder %s476_s15, 1  ;;  %p72_p8 = scmp.lt.s32.totalorder %s476_s15, 3 }
  0x11   : > { %s631_s22 = scalar_select %p551_p6, 1, 0 }
  0x12   : > { %p311_p9 = scmp.eq.s32.totalorder %s530_s0, 0  ;;  %p558_p10 = pnand %p286_p7, %p72_p8 }
  0x13   : > { %s487_s24 = smov [#allocation6]  }
  0x14   : > { %s84_s25 = sshll.u32 %s487_s24, 4  ;;  %p303_p11 = pneg %p558_p10  ;;  %s85_s25 = int_to_ptr.vmem [resolvable:$true] %s84_s25 }
  0x15   : > { %s385_s26 = scalar_lea.vmem %s85_s25, 2048  ;;  %p393_p3 = scmp.lt.s32.totalorder %s85_s25, %s85_s25 }
  0x16   : > { %p304_p12 = pnand %p311_p9, %p303_p11  ;;  %p386_p0 = scmp.ne.s32.totalorder %s85_s25, %s385_s26 }
  0x17   : > { %p394_p4 = scmp.lt.s32.totalorder %s385_s26, %s385_s26 }
  0x18   : > { %p376_p13 = pneg %p304_p12 }
  0x19   : > { %p395_p6 = por %p394_p4, %p393_p3 }
  0x1a   : > { %p388_p1 = pnand %p386_p0, %p376_p13 }
  0x1c   : > { %p389_p2 = pneg %p388_p1 }
  0x1e   : > { %p396_p7 = pnand %p395_p6, %p389_p2 }
  0x20   : > { %399 = shalt.err (!%p396_p7)
}
  0x21   : > { %s488_s27 = smov 128   ;;  %s489_s28 = smov 8  }
  0x22   : > { %306 = dma.hbm_to_vmem [thread:$0]  (!%p304_p12), %s628_s1, 2048, %s85_s25, [#allocation7], %s488_s27, %s488_s27, %s489_s28  }
  0x23   : > { %100 = sbr.rel (%p558_p10) target bundleno = 89 (0x59), region = 24 }
  0x28   : > { %453 = dma.done.wait (%p311_p9), [#allocation7], 2048  }
  0x29   : > { %455 = vsyncadd (%p311_p9), [#allocation7], 4294965248  ;;  %s112_s3 = sand.u32 1, %s468_s13   ;;  %s291_s4 = sshll.u32 %s530_s0, 3 }
  0x2a   : > { %s579_s5 = sshll.u32 %s112_s3, 3  ;;  %s478_s7 = smov 0  }
  0x2b   : > { %s114_s6 = scalar_lea.vmem [#allocation9], %s579_s5 }
  0x2c LB: >> { %s122_s8 = sadd.s32 %s480_s7, %s291_s4  ;;  %s125_s11 = scalar_lea.vmem [#allocation2], %s480_s7  ;;  %s480_s7 = sphi %s478_s7, %s121_s7  }
  0x2d   : >> { %s123_s9 = sld [smem:[#allocation5 + %s122_s8]] }
  0x33   : >> { %s124_s10 = scalar_lea.vmem [#allocation6], %s123_s9 }
  0x34   : >> { %v144_v0 = vld [vmem:[%s124_s10] sm:$0x1] }
  0x35   : >> { %145 = vst [vmem:[%s125_s11] sm:$0x1] %v144_v0 }
  0x36   : >> { %171 = vsyncadd [#allocation3], 16  ;;  %s121_s7 = sadd.s32 1, %s480_s7  }
  0x37   : >> { %p118_p6 = scmp.ge.s32.totalorder %s121_s7, 8  }
  0x38   : > { %s482_s16 = smov (%p118_p6), 0  }
  0x39   : > { %120 = sbr.rel (!%p118_p6) target bundleno = 44 (0x2c), region = 117 }
  0x3e LB: >> { %456 = dma.done.wait [#allocation3], 16  ;;  %s484_s16 = sphi %s482_s16, %s177_s16  }
  0x3f   : >> { %457 = vsyncadd [#allocation3], 4294967280  ;;  %s177_s16 = sadd.s32 1, %s484_s16  }
  0x40   : >> { %p174_p8 = scmp.ge.s32.totalorder %s177_s16, 8  }
  0x41   : > { %v181_v1 = vld [vmem:[#allocation2] sm:$0xff] (%p174_p8)  ;;  %s293_s18 = sshll.u32 (%p174_p8), %s530_s0, 7  ;;  %s198_s25 = sshll.u32 (%p174_p8), %s114_s6, 4  ;;  %s199_s25 = int_to_ptr.vmem [resolvable:$true] %s198_s25 }
  0x42   : > { %176 = sbr.rel (!%p174_p8) target bundleno = 62 (0x3e), region = 128  ;;  %v182_v2 = vmul.f32 (%p174_p8), 11.313708, %v181_v1  ;;  %s586_s24 = scalar_lea.hbm (%p174_p8), %s629_s2, %s293_s18 }
  0x43   : > { %s185_s26 = scalar_lea.sflag (%p174_p8), [#allocation8], %s112_s3  ;;  %s400_s27 = scalar_lea.vmem (%p174_p8), %s199_s25, 128 }
  0x44   : > { %183 = vst [vmem:[%s114_s6] sm:$0xff] (%p174_p8), %v182_v2  ;;  %p401_p9 = scmp.ne.s32.totalorder (%p174_p8), %s199_s25, %s400_s27  ;;  %s490_s28 = smov (%p174_p8), [#allocation9]  }
  0x45   : > { %s404_s0 = sshll.u32 (%p174_p8), %s490_s28, 4  ;;  %s405_s0 = int_to_ptr.vmem [resolvable:$false] %s404_s0 }
  0x46   : > { %p402_p10 = pnand (%p174_p8), %p401_p9, %p547_p5  ;;  %s406_s29 = scalar_lea.vmem (%p174_p8), %s405_s0, 256 }
  0x47   : > { %p407_p12 = scmp.lt.s32.totalorder %s199_s25, %s405_s0  ;;  %p408_p13 = scmp.lt.s32.totalorder %s406_s29, %s400_s27 }
  0x48   : > { %p403_p11 = pneg %p402_p10 }
  0x49   : > { %p409_p0 = por %p408_p13, %p407_p12 }
  0x4b   : > { %p410_p1 = pnand %p409_p0, %p403_p11 }
  0x4d   : > { %413 = shalt.err (!%p410_p1)
}
  0x4e   : > { %s414_s30 = scalar_lea.hbm %s586_s24, 128  ;;  %s418_s5 = scalar_lea.hbm %s629_s2, 256 }
  0x4f   : > { %p415_p2 = scmp.ne.s32.totalorder %s586_s24, %s414_s30  ;;  %p419_p7 = scmp.lt.s32.totalorder %s586_s24, %s629_s2 }
  0x50   : > { %p420_p6 = scmp.lt.s32.totalorder %s418_s5, %s414_s30 }
  0x51   : > { %p416_p3 = pnand %p415_p2, %p547_p5 }
  0x52   : > { %p421_p8 = por %p420_p6, %p419_p7 }
  0x53   : > { %p417_p4 = pneg %p416_p3 }
  0x55   : > { %p422_p9 = pnand %p421_p8, %p417_p4 }
  0x57   : > { %425 = shalt.err (!%p422_p9)
}
  0x58   : > { %301 = dma.vmem_to_hbm [thread:$0]  (%p547_p5), %s199_s25, 128, %s586_s24, %s185_s26  }
  0x59 PF: > { %p313_p10 = scmp.ge.s32.totalorder %s476_s15, 2  ;;  %s210_s8 = sand.u32 1, %s464_s12  }
  0x5a   : > { %p633_p11 = scmp.ne.s32.totalorder %s631_s22, 0  ;;  %s211_s9 = scalar_lea.sflag [#allocation8], %s210_s8 }
  0x5c   : > { %p308_p12 = pnand %p313_p10, %p633_p11 }
  0x5e   : > { %p309_p13 = pneg %p308_p12 }
  0x60   : > { %459 = dma.done.wait (%p309_p13), %s211_s9, 128  }
  0x61   : > { %461 = vsyncadd (%p309_p13), %s211_s9, 4294967168  ;;  %p17_p0 = scmp.ge.s32.totalorder %s534_s17, 4   ;;  %s634_s12 = smov %s468_s13 }
  0x62   : > { %s635_s13 = smov %s472_s14  ;;  %s636_s14 = smov %s545_s20 }
  0x63   : > { %s637_s15 = smov %s534_s17  ;;  %19 = sbr.rel (!%p17_p0) target bundleno = 9 (0x9), region = 139 }
  0x68   :  { %216 = vsyncpa [#allocation7], 1 }
  0x69   :  { %218 = vsyncpa [#allocation7 + $0x1], 1 }
  0x6a   :  { %219 = vsyncpa [#allocation8], 1 }
  0x6b   :  { %221 = vsyncpa [#allocation8 + $0x1], 1 }
  0x6c   :  { %222 = vsyncmov [#allocation3] }
  0x6f   :  { %s223_s15 = vpop.sfrf %222 }
  0x70   :  { %p296_p5 = scmp.ne.s32.totalorder %s223_s15, 0 }
  0x72   :  { %227 = shalt.err (%p296_p5)  }

</bundles_post_ra>
